<compile_context>
chip_gen: v7x
topology: tpu7x:2x2x1
jax: 0.10.0
libtpu: 0.0.40
codegen_flags: <defaults>
</compile_context>

<pallas_src>
import jax
import jax.numpy as jnp
from jax.experimental import pallas as pl
from jax.experimental.pallas import tpu as pltpu


# --------------------------------------------------------------------------
# helpers
# --------------------------------------------------------------------------
def _round_up(x, m):
    return ((x + m - 1) // m) * m


def _choose_tile(dim, align, max_tile, min_chunks=1):
    """Tile size (multiple of `align`, roughly <= max_tile) splitting `dim` into
    near-equal chunks; returns (tile, padded_dim) with padded_dim % tile == 0."""
    padded = _round_up(dim, align)
    chunks = max(min_chunks, pl.cdiv(padded, max_tile))
    tile = _round_up(pl.cdiv(padded, chunks), align)
    return tile, _round_up(padded, tile)


def _hw_params():
    """Per-generation knobs (MXU width alignment, #TensorCores, VMEM limit)."""
    try:
        kind = jax.devices()[0].device_kind.lower()
    except Exception:  # pragma: no cover - e.g. no devices during tracing tests
        kind = ""
    if "v5" in kind:           # v5e / v5 lite: 4x128 MXU, 1 TC, 128 MiB VMEM
        return dict(mxu_align=128, num_cores=1, vmem_limit=100 << 20)
    if "v6" in kind:           # v6e: 2x256 MXU, 1 TC, 128 MiB VMEM
        return dict(mxu_align=256, num_cores=1, vmem_limit=100 << 20)
    if "v7" in kind:           # v7x: 2x256 MXU, 2 TC, 64 MiB VMEM
        return dict(mxu_align=256, num_cores=2, vmem_limit=48 << 20)
    return dict(mxu_align=128, num_cores=1, vmem_limit=None)


def _sublane_align(itemsize):
    return {4: 8, 2: 16, 1: 32}.get(itemsize, 8)


# --------------------------------------------------------------------------
# kernels  (weight is stored [K, N]; all matmuls are plain row-major contractions)
# --------------------------------------------------------------------------
def _linear_kernel_fullk(x_ref, w_ref, o_ref):
    # x: [tb, K], w: [K, tn] -> o: [tb, tn]; single MXU pass, f32 accumulation.
    o_ref[...] = jnp.dot(
        x_ref[...], w_ref[...], preferred_element_type=jnp.float32
    ).astype(o_ref.dtype)


def _linear_kernel_ktiled_f32out(x_ref, w_ref, o_ref):
    # K is tiled and the output is f32: accumulate directly into the resident
    # output block (saves the tb*tn*4B scratch + final copy).
    @pl.when(pl.program_id(2) == 0)
    def _():
        o_ref[...] = jnp.zeros_like(o_ref)

    o_ref[...] += jnp.dot(
        x_ref[...], w_ref[...], preferred_element_type=jnp.float32
    )


def _linear_kernel_ktiled_scratch(x_ref, w_ref, o_ref, acc_ref):
    # K is tiled, output is a narrow dtype: accumulate in f32 VMEM scratch.
    @pl.when(pl.program_id(2) == 0)
    def _():
        acc_ref[...] = jnp.zeros_like(acc_ref)

    acc_ref[...] += jnp.dot(
        x_ref[...], w_ref[...], preferred_element_type=jnp.float32
    )

    @pl.when(pl.program_id(2) == pl.num_programs(2) - 1)
    def _():
        o_ref[...] = acc_ref[...].astype(o_ref.dtype)


# --------------------------------------------------------------------------
# module: weight prepared once at init, reused every forward call
# --------------------------------------------------------------------------
class SingleParameterLinear:
    """out = x @ weight.T, with `weight` given in PyTorch nn.Linear layout [N, K].

    The weight is cast / zero-padded / transposed to [K_pad, N_pad] exactly once
    at construction time; forward calls only touch the (small) activation.
    """

    def __init__(self, weight, *, compute_dtype=None,
                 max_tb=512, max_tn=512, max_tk=2048):
        N, K = weight.shape
        self.N, self.K = int(N), int(K)
        self.compute_dtype = compute_dtype
        self.max_tb = max_tb
        self.hw = _hw_params()
        mxu_align = self.hw["mxu_align"]

        # ---- static tile choices for the weight dims (N, K) ----------------
        # N: lane-dense 128-multiples; 256-aligned on 256-wide MXUs when N is
        # big enough that the extra padding is free.  On v7x split N (never B)
        # across the two TensorCores.
        align_n = mxu_align if N >= mxu_align else 128
        min_n_chunks = (self.hw["num_cores"]
                        if _round_up(N, align_n) >= self.hw["num_cores"] * align_n
                        else 1)
        self.tn, self.N_pad = _choose_tile(N, align_n, max_tn,
                                           min_chunks=min_n_chunks)
        # K: one full block (single MXU pass, no accumulator) when small,
        # otherwise a 256/128-aligned reduction tile.
        if _round_up(K, 128) <= max_tk:
            self.K_pad = _round_up(K, 128)
            self.tk = self.K_pad
        else:
            self.tk, self.K_pad = _choose_tile(K, mxu_align, max_tk)
        self.grid_n = self.N_pad // self.tn
        self.grid_k = self.K_pad // self.tk

        # ---- one-time weight preparation (cast + pad + transpose to [K, N]) -
        w = weight
        if compute_dtype is not None:
            w = w.astype(compute_dtype)
        if (self.N_pad, self.K_pad) != (N, K):
            w = jnp.pad(w, ((0, self.N_pad - N), (0, self.K_pad - K)))
        self.w_kn = jnp.asarray(jnp.transpose(w))          # [K_pad, N_pad], cached

    # ----------------------------------------------------------------------
    def __call__(self, x):
        B, K = x.shape
        assert K == self.K, "input_size mismatch"
        out_dtype = x.dtype

        if self.compute_dtype is not None:
            x = x.astype(self.compute_dtype)

        x_item = jnp.dtype(x.dtype).itemsize
        w_item = jnp.dtype(self.w_kn.dtype).itemsize
        out_item = jnp.dtype(out_dtype).itemsize
        need_acc = (self.grid_k > 1) and (out_dtype != jnp.float32)

        # ---- batch tile: dtype-aware sublane alignment, single tile when it
        # fits VMEM (grid_b == 1 keeps the weight streamed exactly once even on
        # the K-tiled path).  No forced multi-way split.
        sub = _sublane_align(x_item)
        budget = int(0.75 * (self.hw["vmem_limit"] or (32 << 20)))
        cap = self.max_tb
        while True:
            tb, B_pad = _choose_tile(B, sub, cap)
            footprint = (2 * tb * self.tk * x_item            # x, double-buffered
                         + 2 * self.tk * self.tn * w_item     # w, double-buffered
                         + 2 * tb * self.tn * out_item        # out, double-buffered
                         + (tb * self.tn * 4 if need_acc else 0))
            if footprint <= budget or cap <= sub:
                break
            cap = max(sub, cap // 2)
        grid_b = B_pad // tb

        # ---- pad the activation only (zeros are exact for a matmul) --------
        if (B_pad, self.K_pad) != (B, K):
            x = jnp.pad(x, ((0, B_pad - B), (0, self.K_pad - K)))

        cost = pl.CostEstimate(
            flops=2 * B_pad * self.K_pad * self.N_pad,
            transcendentals=0,
            bytes_accessed=(B_pad * self.K_pad * x_item * self.grid_n
                            + self.K_pad * self.N_pad * w_item
                              * (grid_b if self.grid_k > 1 else 1)
                            + B_pad * self.N_pad * out_item),
        )
        cp_kwargs = {}
        if self.hw["vmem_limit"] is not None:
            cp_kwargs["vmem_limit_bytes"] = self.hw["vmem_limit"]

        # TODO(synk): for sub-tile problems (B*N below one vreg-scale tile) a
        # plain jnp.dot bypass beats the pallas_call fixed overhead; kept on the
        # Pallas path here so the kernel is always exercised.

        if self.grid_k == 1:
            # grid = (n, b): weight block index depends only on the OUTER axis,
            # so consecutive b-steps reuse the resident weight tile (no re-DMA)
            # -> the weight streams from HBM exactly once per call.
            out = pl.pallas_call(
                _linear_kernel_fullk,
                out_shape=jax.ShapeDtypeStruct((B_pad, self.N_pad), out_dtype),
                grid_spec=pltpu.PrefetchScalarGridSpec(
                    num_scalar_prefetch=0,
                    grid=(self.grid_n, grid_b),
                    in_specs=[
                        pl.BlockSpec((tb, self.K_pad), lambda j, i: (i, 0)),   # x
                        pl.BlockSpec((self.K_pad, self.tn), lambda j, i: (0, j)),  # w [K,N]
                    ],
                    out_specs=pl.BlockSpec((tb, self.tn), lambda j, i: (i, j)),
                ),
                compiler_params=pltpu.CompilerParams(
                    dimension_semantics=("parallel", "parallel"), **cp_kwargs),
                cost_estimate=cost,
            )(x, self.w_kn)
        else:
            kernel = (_linear_kernel_ktiled_scratch if need_acc
                      else _linear_kernel_ktiled_f32out)
            scratch = ([pltpu.VMEM((tb, self.tn), jnp.float32)] if need_acc else [])
            out = pl.pallas_call(
                kernel,
                out_shape=jax.ShapeDtypeStruct((B_pad, self.N_pad), out_dtype),
                grid_spec=pltpu.PrefetchScalarGridSpec(
                    num_scalar_prefetch=0,
                    grid=(self.grid_n, grid_b, self.grid_k),
                    in_specs=[
                        pl.BlockSpec((tb, self.tk), lambda j, i, k: (i, k)),       # x
                        pl.BlockSpec((self.tk, self.tn), lambda j, i, k: (k, j)),  # w [K,N]
                    ],
                    out_specs=pl.BlockSpec((tb, self.tn), lambda j, i, k: (i, j)),
                    scratch_shapes=scratch,
                ),
                compiler_params=pltpu.CompilerParams(
                    dimension_semantics=("parallel", "parallel", "arbitrary"),
                    **cp_kwargs),
                cost_estimate=cost,
            )(x, self.w_kn)

        if (B_pad, self.N_pad) != (B, self.N):
            out = out[:B, :self.N]
        return out


# --------------------------------------------------------------------------
if __name__ == "__main__":
    # Shapes consistent with SingleParameterModule(input_size, hidden_size)
    batch, input_size, hidden_size = 8, 32, 64

    key = jax.random.PRNGKey(0)
    kx, kw = jax.random.split(key)

    x = jax.random.normal(kx, (batch, input_size), dtype=jnp.float32)
    # Deterministic init mimicking nn.Linear's uniform(-1/sqrt(K), 1/sqrt(K))
    bound = 1.0 / (input_size ** 0.5)
    weight = jax.random.uniform(
        kw, (hidden_size, input_size), dtype=jnp.float32,
        minval=-bound, maxval=bound,
    )

    # f32 path (weight prepared once; two calls reuse the cached weight).
    layer = SingleParameterLinear(weight)
    out = jax.block_until_ready(layer(x))
    _ = jax.block_until_ready(layer(x))          # second call: no weight re-prep
    ref = x @ weight.T
    assert out.shape == (batch, hidden_size)
    assert jnp.allclose(out, ref, atol=1e-5, rtol=1e-5)

    # bf16 MXU-compute path (f32 accumulation) on the same shapes.
    layer_bf16 = SingleParameterLinear(weight, compute_dtype=jnp.bfloat16)
    out_bf16 = jax.block_until_ready(layer_bf16(x))
    assert out_bf16.shape == (batch, hidden_size)
    assert jnp.allclose(out_bf16, ref, atol=5e-2, rtol=5e-2)

    # K-tiled path (K > max_tk): accumulates directly into the f32 output block.
    B2, K2, N2 = 24, 4096, 192
    kx2, kw2 = jax.random.split(jax.random.PRNGKey(1))
    x2 = jax.random.normal(kx2, (B2, K2), dtype=jnp.float32)
    w2 = jax.random.uniform(kw2, (N2, K2), dtype=jnp.float32,
                            minval=-1.0 / (K2 ** 0.5), maxval=1.0 / (K2 ** 0.5))
    layer2 = SingleParameterLinear(w2)
    out2 = jax.block_until_ready(layer2(x2))
    ref2 = x2 @ w2.T
    assert out2.shape == (B2, N2)
    assert jnp.allclose(out2, ref2, atol=1e-3, rtol=1e-3)

    print("KERNEL_OK")
</pallas_src>

<mosaic_0001>
module attributes {stable_mosaic.version = 11 : i64} {
  func.func @_linear_kernel_fullk(%arg0: i32, %arg1: i32, %arg2: memref<8x128xf32, #tpu.memory_space<vmem>>, %arg3: memref<128x128xf32, #tpu.memory_space<vmem>>, %arg4: memref<8x128xf32, #tpu.memory_space<vmem>>) attributes {dimension_semantics = [#tpu.dimension_semantics<parallel>, #tpu.dimension_semantics<parallel>], iteration_bounds = array<i64: 1, 1>, scalar_prefetch = 0 : i64, scratch_operands = 0 : i64, tpu.core_type = #tpu.core_type<tc>, window_params = [{transform_indices = @transform_0, window_bounds = array<i64: 8, 128>}, {transform_indices = @transform_1, window_bounds = array<i64: 128, 128>}, {transform_indices = @transform_2, window_bounds = array<i64: 8, 128>}]} {
    %c0 = arith.constant 0 : index
    %c0_0 = arith.constant 0 : index
    %0 = vector.load %arg2[%c0, %c0_0] : memref<8x128xf32, #tpu.memory_space<vmem>>, vector<8x128xf32>
    %c0_1 = arith.constant 0 : index
    %c0_2 = arith.constant 0 : index
    %1 = vector.load %arg3[%c0_1, %c0_2] : memref<128x128xf32, #tpu.memory_space<vmem>>, vector<128x128xf32>
    %cst = arith.constant dense<0.000000e+00> : vector<8x128xf32>
    %2 = tpu.matmul %0, %1, %cst {dimension_numbers = #tpu.dot_dimension_numbers<[1], [0], [0], [1], [0, 0, 1, 1], [], []>} : vector<8x128xf32>, vector<128x128xf32>, vector<8x128xf32> -> vector<8x128xf32>
    %c0_3 = arith.constant 0 : index
    %c0_4 = arith.constant 0 : index
    %3 = vector.load %arg4[%c0_3, %c0_4] : memref<8x128xf32, #tpu.memory_space<vmem>>, vector<8x128xf32>
    tpu.vector_store %arg4[%c0_3, %c0_4], %2 {strides = array<i32>} : memref<8x128xf32, #tpu.memory_space<vmem>>, vector<8x128xf32>,
    return
  }
  func.func @transform_0(%arg0: i32, %arg1: i32) -> (i32, i32) {
    %c0_i32 = arith.constant 0 : i32
    %c0_i32_0 = arith.constant 0 : i32
    return %arg1, %c0_i32 : i32, i32
  }
  func.func @transform_1(%arg0: i32, %arg1: i32) -> (i32, i32) {
    %c0_i32 = arith.constant 0 : i32
    %c0_i32_0 = arith.constant 0 : i32
    return %c0_i32, %arg0 : i32, i32
  }
  func.func @transform_2(%arg0: i32, %arg1: i32) -> (i32, i32) {
    %c0_i32 = arith.constant 0 : i32
    return %arg1, %arg0 : i32, i32
  }
}

</mosaic_0001>

<bundles_post_ra>
// kernel: tpu_custom_call.1
= control target key start
LH: loop header
LB: loop body
LE: loop exit
PB: predicated region body
PF: predicated region fallthrough
CT: control target
= control target key end

     0   :  { %7 = vsyncpa [#allocation3], 0  ;;  %s364_s0 = inlined_call_operand.hbm [shape: f32[8,128], index: 0, kind: input, shape index: {}]   ;;  %s365_s1 = inlined_call_operand.hbm [shape: f32[128,128], index: 1, kind: input, shape index: {}]   ;;  %s366_s2 = inlined_call_operand.hbm [shape: f32[8,128], index: 2, kind: output, shape index: {}]  }
   0x1   :  { %8 = vsyncpa [#allocation6], 0 }
   0x2   :  { %9 = vsyncpa [#allocation4], 0  ;;  %s298_s9 = smov [#allocation2]   ;;  %s299_s11 = smov [#allocation5]  }
   0x3   :  { %s16_s10 = sshll.u32 %s298_s9, 4  ;;  %s25_s12 = sshll.u32 %s299_s11, 4  ;;  %s17_s10 = int_to_ptr.vmem [resolvable:$true] %s16_s10  ;;  %s321_s12 = int_to_ptr.vmem [resolvable:$true] %s25_s12 }
   0x4   :  { %s226_s15 = scalar_lea.hbm %s364_s0, 128 }
   0x5   :  { %p227_p0 = scmp.ne.s32.totalorder %s364_s0, %s226_s15  ;;  %p230_p1 = scmp.lt.u32.totalorder %s226_s15, %s364_s0 }
   0x7   :  { %p232_p2 = pnand %p230_p1, %p227_p0 }
   0x9   :  { %235 = shalt.err (!%p232_p2)
}
   0xa   :  { %s236_s20 = scalar_lea.vmem %s17_s10, 128  ;;  %p241_p4 = scmp.lt.s32.totalorder %s17_s10, %s17_s10 }
   0xb   :  { %p237_p3 = scmp.ne.s32.totalorder %s17_s10, %s236_s20  ;;  %p242_p5 = scmp.lt.s32.totalorder %s236_s20, %s236_s20 }
   0xd   :  { %p243_p6 = por %p242_p5, %p241_p4 }
   0xf   :  { %p244_p7 = pnand %p243_p6, %p237_p3 }
  0x11   :  { %247 = shalt.err (!%p244_p7)
}
  0x12   :  { %19 = dma.hbm_to_vmem [thread:$0]  %s364_s0, 128, %s17_s10, [#allocation3]  }
  0x13   :  { %s248_s25 = scalar_lea.hbm %s365_s1, 2048 }
  0x14   :  { %p249_p8 = scmp.ne.s32.totalorder %s365_s1, %s248_s25  ;;  %p252_p9 = scmp.lt.u32.totalorder %s248_s25, %s365_s1 }
  0x16   :  { %p254_p10 = pnand %p252_p9, %p249_p8 }
  0x18   :  { %257 = shalt.err (!%p254_p10)
}
  0x19   :  { %s258_s30 = scalar_lea.vmem %s321_s12, 2048  ;;  %p263_p12 = scmp.lt.s32.totalorder %s321_s12, %s321_s12 }
  0x1a   :  { %p259_p11 = scmp.ne.s32.totalorder %s321_s12, %s258_s30  ;;  %p264_p13 = scmp.lt.s32.totalorder %s258_s30, %s258_s30 }
  0x1c   :  { %p265_p0 = por %p264_p13, %p263_p12 }
  0x1e   :  { %p266_p1 = pnand %p265_p0, %p259_p11 }
  0x20   :  { %269 = shalt.err (!%p266_p1)
}
  0x21   :  { %s300_s0 = smov 128   ;;  %s301_s3 = smov 8  }
  0x22   :  { %31 = dma.hbm_to_vmem [thread:$0]  %s365_s1, 2048, %s321_s12, [#allocation6], %s300_s0, %s300_s0, %s301_s3  }
  0x23   :  { %292 = dma.done.wait [#allocation3], 128  }
  0x24   :  { %293 = vsyncadd [#allocation3], 4294967168 }
  0x25   :  { %294 = dma.done.wait [#allocation6], 2048  }
  0x26   :  { %295 = vsyncadd [#allocation6], 4294965248  ;;  %v302_v0 = vmov 0.0|0.0   ;;  %vm303_vm0 = vmmov 0   ;;  %v304_v1 = vmov 0.0   ;;  %v39_v2 = vld [vmem:[#allocation5] sm:$0xff] }
  0x27   :  { %194 = vmatprep.subr.bf16.mxu0 %v302_v0  ;;  %191 = vmatprep.mubr.msk.f32.mxu0 %vm303_vm0, %v304_v1  ;;  %v40_v3 = vld [vmem:[#allocation5 + $0x8] sm:$0xff]  ;;  %v41_v4 = vld [vmem:[#allocation5 + $0x10] sm:$0xff]  ;;  %v42_v6 = vld [vmem:[#allocation5 + $0x18] sm:$0xff]  ;;  %s305_s1 = smov [#allocation7]  }
  0x28   :  { %v195_v5 = vpack.c.bf16 %v40_v3, %v39_v2  ;;  %v198_v7 = vpack.c.bf16 %v42_v6, %v41_v4  ;;  %v43_v8 = vld [vmem:[#allocation5 + $0x20] sm:$0xff]  ;;  %v44_v9 = vld [vmem:[#allocation5 + $0x28] sm:$0xff]  ;;  %v45_v11 = vld [vmem:[#allocation5 + $0x30] sm:$0xff]  ;;  %s132_s6 = sshll.u32 %s305_s1, 4  ;;  %s133_s6 = int_to_ptr.vmem [resolvable:$true] %s132_s6 }
  0x29   :  { %v201_v10 = vpack.c.bf16 %v44_v9, %v43_v8  ;;  %v46_v12 = vld [vmem:[#allocation5 + $0x38] sm:$0xff]  ;;  %v47_v14 = vld [vmem:[#allocation5 + $0x40] sm:$0xff]  ;;  %v48_v15 = vld [vmem:[#allocation5 + $0x48] sm:$0xff]  ;;  %s270_s7 = scalar_lea.vmem %s133_s6, 128  ;;  %p275_p3 = scmp.lt.s32.totalorder %s133_s6, %s133_s6 }
  0x2a   :  { %196 = vmatpush3.bf16.msra.mxu0 %v195_v5  ;;  %v204_v13 = vpack.c.bf16 %v46_v12, %v45_v11  ;;  %v207_v16 = vpack.c.bf16 %v48_v15, %v47_v14  ;;  %v49_v17 = vld [vmem:[#allocation5 + $0x50] sm:$0xff]  ;;  %v50_v18 = vld [vmem:[#allocation5 + $0x58] sm:$0xff]  ;;  %v51_v20 = vld [vmem:[#allocation5 + $0x60] sm:$0xff]  ;;  %p271_p2 = scmp.ne.s32.totalorder %s133_s6, %s270_s7  ;;  %p276_p4 = scmp.lt.s32.totalorder %s270_s7, %s270_s7 }
  0x2b   :  { %197 = vmatprep.subr.bf16.mxu0 %v302_v0  ;;  %v210_v19 = vpack.c.bf16 %v50_v18, %v49_v17  ;;  %v52_v21 = vld [vmem:[#allocation5 + $0x68] sm:$0xff]  ;;  %v53_v23 = vld [vmem:[#allocation5 + $0x70] sm:$0xff]  ;;  %v54_v24 = vld [vmem:[#allocation5 + $0x78] sm:$0xff] }
  0x2c   :  { %v213_v22 = vpack.c.bf16 %v52_v21, %v51_v20  ;;  %v216_v25 = vpack.c.bf16 %v54_v24, %v53_v23  ;;  %v38_v26 = vld [vmem:[#allocation2] sm:$0xff]  ;;  %p277_p5 = por %p276_p4, %p275_p3 }
  0x2e   :  { %199 = vmatpush3.bf16.msra.mxu0 %v198_v7  ;;  %p278_p6 = pnand %p277_p5, %p271_p2 }
  0x2f   :  { %200 = vmatprep.subr.bf16.mxu0 %v302_v0 }
  0x32   :  { %202 = vmatpush3.bf16.msra.mxu0 %v201_v10 }
  0x33   :  { %203 = vmatprep.subr.bf16.mxu0 %v302_v0 }
  0x36   :  { %205 = vmatpush3.bf16.msra.mxu0 %v204_v13 }
  0x37   :  { %206 = vmatprep.subr.bf16.mxu0 %v302_v0 }
  0x3a   :  { %208 = vmatpush3.bf16.msra.mxu0 %v207_v16 }
  0x3b   :  { %209 = vmatprep.subr.bf16.mxu0 %v302_v0 }
  0x3e   :  { %211 = vmatpush3.bf16.msra.mxu0 %v210_v19 }
  0x3f   :  { %212 = vmatprep.subr.bf16.mxu0 %v302_v0 }
  0x42   :  { %214 = vmatpush3.bf16.msra.mxu0 %v213_v22 }
  0x43   :  { %215 = vmatprep.subr.bf16.mxu0 %v302_v0 }
  0x46   :  { %217 = vmatpush3.bf16.msra.mxu0 %v216_v25 }
  0x49   :  { %192 = vmatmul.mubr.f32.vlgmr.msra.gmra.mrb[0].mxu0 %v38_v26 }
 0x11c   :  { %v121_v27 = vpop.f32.mrb[0].mxu0 }
 0x11d   :  { %125 = vst [vmem:[#allocation7] sm:$0xff] %v121_v27  ;;  %v193_v28 = vpop.f32.mrb[1].mxu0 }
 0x11e   :  { %281 = shalt.err (!%p278_p6)
}
 0x11f   :  { %s282_s10 = scalar_lea.hbm %s366_s2, 128 }
 0x120   :  { %p283_p7 = scmp.ne.s32.totalorder %s366_s2, %s282_s10  ;;  %p286_p8 = scmp.lt.u32.totalorder %s282_s10, %s366_s2 }
 0x122   :  { %p288_p9 = pnand %p286_p8, %p283_p7 }
 0x124   :  { %291 = shalt.err (!%p288_p9)
}
 0x125   :  { %135 = dma.vmem_to_hbm [thread:$0]  %s133_s6, 128, %s366_s2, [#allocation4]  }
 0x126   :  { %296 = dma.done.wait [#allocation4], 128  }
 0x127   :  { %297 = vsyncadd [#allocation4], 4294967168 }
 0x128   :  { %139 = vsyncpa [#allocation3], 1 }
 0x129   :  { %140 = vsyncpa [#allocation6], 1 }
 0x12a   :  { %141 = vsyncpa [#allocation4], 1 }

</bundles_post_ra>
